<compile_context>
chip_gen: v5e
topology: v5e:2x2
jax: 0.10.0
libtpu: 0.0.40
codegen_flags: <defaults>
</compile_context>

<pallas_src>
import functools
import math

import jax
import jax.numpy as jnp
from jax.experimental import pallas as pl
from jax.experimental.pallas import tpu as pltpu


def _fill_value(dtype):
    """Identity element for max() in the given dtype."""
    dtype = jnp.dtype(dtype)
    if jnp.issubdtype(dtype, jnp.floating):
        return float("-inf")
    if jnp.issubdtype(dtype, jnp.integer):
        return int(jnp.iinfo(dtype).min)
    if dtype == jnp.bool_:
        return False
    raise TypeError(f"unsupported dtype for GlobalMaxPool1d: {dtype}")


def _round_up(x, m):
    return ((x + m - 1) // m) * m


def _select_tiles(rows, length, itemsize, block_budget_bytes):
    """Pick (tr, tl) so one input block is ~block_budget_bytes and layout-friendly."""
    # Sublane packing: 8 for 4-byte, 16 for 2-byte, 32 for 1-byte dtypes.
    sub = max(8, 32 // max(1, itemsize))

    # Row tile: cdiv-based (no divisibility requirement), multiple of the
    # sublane pack, capped at 512 rows.
    tr = min(512, _round_up(rows, sub))
    tr = max(sub, (tr // sub) * sub)

    # Give the "parallel" row axis >=2 blocks when possible (v7x megacore).
    if pl.cdiv(rows, tr) < 2 and rows > sub:
        tr = max(sub, _round_up(pl.cdiv(rows, 2), sub))

    # Lane tile: full extent if it fits the budget, else the largest multiple
    # of 128 within budget; prefer a mask-free size (one that divides length)
    # if it exists without shrinking the block by more than 2x.
    max_tl = max(128, block_budget_bytes // (tr * itemsize))
    if length <= max_tl:
        tl = length
    else:
        tl = (max_tl // 128) * 128
        t = tl
        while t >= max(128, tl // 2):
            if length % t == 0:
                tl = t
                break
            t -= 128
    return tr, tl


def _global_max_kernel(x_ref, o_ref, acc_ref, *, fill, tail, needs_mask,
                       group_fold):
    """Streaming max over lane tiles.

    x_ref:   (TR, TL) input tile in VMEM
    o_ref:   (TR, 1)  output block (resident across the lane-tile grid axis)
    acc_ref: (TR, 128) VMEM scratch running max (used when group_fold)
    """
    k = pl.program_id(1)
    last = pl.num_programs(1) - 1

    if group_fold:
        @pl.when(k == 0)
        def _():
            acc_ref[...] = jnp.full(acc_ref.shape, fill, acc_ref.dtype)

    def fold(tile):
        if group_fold:
            # Pure-VPU fold over vreg-aligned 128-lane groups into the scratch
            # accumulator; no cross-lane (XLU) work in the steady state.
            n_groups = tile.shape[1] // 128
            acc = acc_ref[...]
            for g in range(n_groups):
                acc = jnp.maximum(acc, tile[:, g * 128:(g + 1) * 128])
            acc_ref[...] = acc
        else:
            # Single full-extent lane tile (tl == length, tl % 128 != 0):
            # reduce straight into the output.
            o_ref[...] = jnp.max(tile, axis=1, keepdims=True)

    if needs_mask:
        # Steady-state tiles pay no mask cost; only the final partial tile
        # masks its out-of-bounds lanes.
        @pl.when(k < last)
        def _():
            fold(x_ref[...])

        @pl.when(k == last)
        def _():
            tile = x_ref[...]
            col = jax.lax.broadcasted_iota(jnp.int32, tile.shape, 1)
            fold(jnp.where(col < tail, tile, jnp.full_like(tile, fill)))
    else:
        fold(x_ref[...])

    if group_fold:
        @pl.when(k == last)
        def _():
            # One-time epilogue: single XLU lane reduce + narrow store.
            o_ref[...] = jnp.max(acc_ref[...], axis=-1, keepdims=True)


def global_max_pool_1d(x, *, channel_dim=-1,
                       block_budget_bytes=4 * 1024 * 1024):
    """Equivalent of GlobalMaxPool1d.forward: max over `channel_dim`, keepdim."""
    nd = x.ndim
    dim = channel_dim % nd
    # TODO(synk): for channel_dim != -1 the wrapper moveaxis costs an extra
    # full HBM read+write of x; the default channel_dim=-1 path is unaffected.
    xm = jnp.moveaxis(x, dim, nd - 1) if dim != nd - 1 else x
    lead = xm.shape[:-1]
    length = xm.shape[-1]
    rows = math.prod(lead) if lead else 1
    x2 = xm.reshape(rows, length)

    itemsize = jnp.dtype(x2.dtype).itemsize
    tr, tl = _select_tiles(rows, length, itemsize, block_budget_bytes)
    grid = (pl.cdiv(rows, tr), pl.cdiv(length, tl))
    needs_mask = (length % tl) != 0
    group_fold = (tl % 128) == 0

    kernel = functools.partial(
        _global_max_kernel,
        fill=_fill_value(x2.dtype),
        tail=(length % tl) if needs_mask else tl,
        needs_mask=needs_mask,
        group_fold=group_fold)

    out2 = pl.pallas_call(
        kernel,
        out_shape=jax.ShapeDtypeStruct((rows, 1), x2.dtype),
        grid=grid,
        in_specs=[pl.BlockSpec((tr, tl), lambda i, k: (i, k))],
        out_specs=pl.BlockSpec((tr, 1), lambda i, k: (i, 0)),
        scratch_shapes=[pltpu.VMEM((tr, 128), x2.dtype)],
        compiler_params=pltpu.CompilerParams(
            dimension_semantics=("parallel", "arbitrary"),
            vmem_limit_bytes=32 * 1024 * 1024),
    )(x2)

    out = out2.reshape(lead + (1,))
    if dim != nd - 1:
        out = jnp.moveaxis(out, nd - 1, dim)
    return out


if __name__ == "__main__":
    key = jax.random.PRNGKey(0)
    k1, k2, k3, k4 = jax.random.split(key, 4)

    # 1) Default channel_dim=-1; mask-free lane-group fold (L % 128 == 0),
    #    row axis split into 2 "parallel" blocks.
    x1 = jax.random.normal(k1, (2, 16, 1280), dtype=jnp.float32)
    o1 = jax.block_until_ready(global_max_pool_1d(x1))
    r1 = jnp.max(x1, axis=-1, keepdims=True)
    assert o1.shape == r1.shape, o1.shape
    assert jnp.array_equal(o1, r1)

    # 2) Small block budget to force multi-tile reduction: partial (masked)
    #    last lane tile + partial last row block.
    x2 = jax.random.normal(k2, (3, 13, 1000), dtype=jnp.float32)
    o2 = jax.block_until_ready(
        global_max_pool_1d(x2, block_budget_bytes=64 * 1024))
    r2 = jnp.max(x2, axis=-1, keepdims=True)
    assert o2.shape == r2.shape, o2.shape
    assert jnp.array_equal(o2, r2)

    # 3) Integer dtype (dtype-aware init/mask value), full-extent lane tile.
    x3 = jax.random.randint(k3, (2, 4, 300), -1000, 1000, dtype=jnp.int32)
    o3 = jax.block_until_ready(global_max_pool_1d(x3))
    r3 = jnp.max(x3, axis=-1, keepdims=True)
    assert o3.shape == r3.shape, o3.shape
    assert jnp.array_equal(o3, r3)

    # 4) Non-default channel_dim.
    x4 = jax.random.normal(k4, (2, 6, 10), dtype=jnp.float32)
    o4 = jax.block_until_ready(global_max_pool_1d(x4, channel_dim=1))
    r4 = jnp.max(x4, axis=1, keepdims=True)
    assert o4.shape == r4.shape, o4.shape
    assert jnp.array_equal(o4, r4)

    print("KERNEL_OK")
</pallas_src>

<mosaic_0001>
module attributes {stable_mosaic.version = 11 : i64} {
  func.func @_global_max_kernel(%arg0: i32, %arg1: i32, %arg2: memref<16x1280xf32, #tpu.memory_space<vmem>>, %arg3: memref<16x1xf32, #tpu.memory_space<vmem>>, %arg4: memref<16x128xf32, #tpu.memory_space<vmem>>) attributes {dimension_semantics = [#tpu.dimension_semantics<parallel>, #tpu.dimension_semantics<arbitrary>], iteration_bounds = array<i64: 2, 1>, scalar_prefetch = 0 : i64, scratch_operands = 1 : i64, tpu.core_type = #tpu.core_type<tc>, window_params = [{transform_indices = @transform_0, window_bounds = array<i64: 16, 1280>}, {transform_indices = @transform_1, window_bounds = array<i64: 16, 1>}]} {
    %c0_i32 = arith.constant 0 : i32
    %0 = arith.cmpi eq, %arg1, %c0_i32 : i32
    %1 = arith.extui %0 : i1 to i32
    %c0_i32_0 = arith.constant 0 : i32
    %2 = arith.cmpi ne, %1, %c0_i32_0 : i32
    scf.if %2 {
      %cst = arith.constant 0xFF800000 : f32
      %29 = vector.broadcast %cst : f32 to vector<16x128xf32>
      %c0_8 = arith.constant 0 : index
      %c0_9 = arith.constant 0 : index
      %30 = vector.load %arg4[%c0_8, %c0_9] : memref<16x128xf32, #tpu.memory_space<vmem>>, vector<16x128xf32>
      tpu.vector_store %arg4[%c0_8, %c0_9], %29 {strides = array<i32>} : memref<16x128xf32, #tpu.memory_space<vmem>>, vector<16x128xf32>,
    } else {
    }
    %c0 = arith.constant 0 : index
    %c0_1 = arith.constant 0 : index
    %3 = vector.load %arg2[%c0, %c0_1] : memref<16x1280xf32, #tpu.memory_space<vmem>>, vector<16x1280xf32>
    %c0_2 = arith.constant 0 : index
    %c0_3 = arith.constant 0 : index
    %4 = vector.load %arg4[%c0_2, %c0_3] : memref<16x128xf32, #tpu.memory_space<vmem>>, vector<16x128xf32>
    %5 = vector.extract_strided_slice %3 {offsets = [0, 0], sizes = [16, 128], strides = [1, 1]} : vector<16x1280xf32> to vector<16x128xf32>
    %6 = arith.maximumf %4, %5 : vector<16x128xf32>
    %7 = vector.extract_strided_slice %3 {offsets = [0, 128], sizes = [16, 128], strides = [1, 1]} : vector<16x1280xf32> to vector<16x128xf32>
    %8 = arith.maximumf %6, %7 : vector<16x128xf32>
    %9 = vector.extract_strided_slice %3 {offsets = [0, 256], sizes = [16, 128], strides = [1, 1]} : vector<16x1280xf32> to vector<16x128xf32>
    %10 = arith.maximumf %8, %9 : vector<16x128xf32>
    %11 = vector.extract_strided_slice %3 {offsets = [0, 384], sizes = [16, 128], strides = [1, 1]} : vector<16x1280xf32> to vector<16x128xf32>
    %12 = arith.maximumf %10, %11 : vector<16x128xf32>
    %13 = vector.extract_strided_slice %3 {offsets = [0, 512], sizes = [16, 128], strides = [1, 1]} : vector<16x1280xf32> to vector<16x128xf32>
    %14 = arith.maximumf %12, %13 : vector<16x128xf32>
    %15 = vector.extract_strided_slice %3 {offsets = [0, 640], sizes = [16, 128], strides = [1, 1]} : vector<16x1280xf32> to vector<16x128xf32>
    %16 = arith.maximumf %14, %15 : vector<16x128xf32>
    %17 = vector.extract_strided_slice %3 {offsets = [0, 768], sizes = [16, 128], strides = [1, 1]} : vector<16x1280xf32> to vector<16x128xf32>
    %18 = arith.maximumf %16, %17 : vector<16x128xf32>
    %19 = vector.extract_strided_slice %3 {offsets = [0, 896], sizes = [16, 128], strides = [1, 1]} : vector<16x1280xf32> to vector<16x128xf32>
    %20 = arith.maximumf %18, %19 : vector<16x128xf32>
    %21 = vector.extract_strided_slice %3 {offsets = [0, 1024], sizes = [16, 128], strides = [1, 1]} : vector<16x1280xf32> to vector<16x128xf32>
    %22 = arith.maximumf %20, %21 : vector<16x128xf32>
    %23 = vector.extract_strided_slice %3 {offsets = [0, 1152], sizes = [16, 128], strides = [1, 1]} : vector<16x1280xf32> to vector<16x128xf32>
    %24 = arith.maximumf %22, %23 : vector<16x128xf32>
    %c0_4 = arith.constant 0 : index
    %c0_5 = arith.constant 0 : index
    %25 = vector.load %arg4[%c0_4, %c0_5] : memref<16x128xf32, #tpu.memory_space<vmem>>, vector<16x128xf32>
    tpu.vector_store %arg4[%c0_4, %c0_5], %24 {strides = array<i32>} : memref<16x128xf32, #tpu.memory_space<vmem>>, vector<16x128xf32>,
    %c0_i32_6 = arith.constant 0 : i32
    %26 = arith.cmpi eq, %arg1, %c0_i32_6 : i32
    %27 = arith.extui %26 : i1 to i32
    %c0_i32_7 = arith.constant 0 : i32
    %28 = arith.cmpi ne, %27, %c0_i32_7 : i32
    scf.if %28 {
      %c0_8 = arith.constant 0 : index
      %c0_9 = arith.constant 0 : index
      %29 = vector.load %arg4[%c0_8, %c0_9] : memref<16x128xf32, #tpu.memory_space<vmem>>, vector<16x128xf32>
      %cst = arith.constant dense<0xFF800000> : vector<16xf32>
      %30 = vector.multi_reduction <maximumf>, %29, %cst [1] : vector<16x128xf32> to vector<16xf32>
      %31 = vector.shape_cast %30 : vector<16xf32> to vector<16x1xf32>
      %c0_10 = arith.constant 0 : index
      %c0_11 = arith.constant 0 : index
      %32 = vector.load %arg3[%c0_10, %c0_11] : memref<16x1xf32, #tpu.memory_space<vmem>>, vector<16x1xf32>
      tpu.vector_store %arg3[%c0_10, %c0_11], %31 {strides = array<i32>} : memref<16x1xf32, #tpu.memory_space<vmem>>, vector<16x1xf32>,
    } else {
    }
    return
  }
  func.func @transform_0(%arg0: i32, %arg1: i32) -> (i32, i32) {
    %c0_i32 = arith.constant 0 : i32
    return %arg0, %arg1 : i32, i32
  }
  func.func @transform_1(%arg0: i32, %arg1: i32) -> (i32, i32) {
    %c0_i32 = arith.constant 0 : i32
    %c0_i32_0 = arith.constant 0 : i32
    return %arg0, %c0_i32 : i32, i32
  }
}

</mosaic_0001>

<bundles_post_ra>
// kernel: tpu_custom_call.1
= control target key start
LH: loop header
LB: loop body
LE: loop exit
PB: predicated region body
PF: predicated region fallthrough
CT: control target
= control target key end

     0   :  { %6 = vsyncpa [#allocation4], 0  ;;  %s569_s0 = inlined_call_operand.hbm [shape: f32[32,1280], index: 0, kind: input, shape index: {}]   ;;  %s570_s1 = inlined_call_operand.vmem [shape: f32[32,1], index: 1, kind: output, shape index: {}]  }
   0x1   :  { %8 = vsyncpa [#allocation4 + $0x1], 0  ;;  %s466_s6 = smov 0   ;;  %s468_s7 = smov 0  }
   0x2   :  { %s470_s8 = smov 0   ;;  %s472_s9 = smov 0  }
   0x3   :  { %s474_s10 = smov 0   ;;  %s476_s11 = smov 0  }
   0x4 LB: > { %s300_s12 = sadd.s32 4294967295, %s452_s11   ;;  %s26_s13 = sadd.s32 1, %s448_s10  ;;  %s452_s11 = sphi %s476_s11, %s14_s11   ;;  %s448_s10 = sphi %s474_s10, %s576_s10   ;;  %s444_s9 = sphi %s472_s9, %s575_s9   ;;  %s440_s8 = sphi %s470_s8, %s574_s8   ;;  %s436_s7 = sphi %s468_s7, %s573_s7   ;;  %s432_s6 = sphi %s466_s6, %s572_s6  }
   0x5   : > { %p28_p0 = scmp.ge.s32.totalorder %s26_s13, 2  ;;  %s35_s14 = sadd.s32 1, %s440_s8 }
   0x6   : > { %p42_p1 = scmp.ne.s32.totalorder %s440_s8, %s436_s7  ;;  %p43_p2 = scmp.eq.s32.totalorder %s452_s11, 0 }
   0x7   : > { %s578_s13 = smov (%p28_p0, %s26_s13), 0  ;;  %p48_p4 = scmp.ne.s32.totalorder %s436_s7, %s432_s6 }
   0x8   : > { %p44_p3 = por %p43_p2, %p42_p1  ;;  %s30_s15 = ssub.s32 %s448_s10, %s578_s13 }
   0x9   : > { %p49_p5 = scmp.eq.s32.totalorder %s300_s12, 0  ;;  %p33_p6 = scmp.eq.s32.totalorder %s30_s15, 0 }
   0xa   : > { %p321_p8 = scmp.lt.s32.totalorder %s452_s11, 2  ;;  %s98_s18 = sand.u32 1, %s440_s8  }
   0xb   : > { %p505_p7 = por %p49_p5, %p48_p4  ;;  %s313_s19 = smul.u32 160, %s448_s10 }
   0xc   : > { %s511_s17 = scalar_select %p33_p6, %s440_s8, %s35_s14  }
   0xd   : > { %s312_s20 = smul.u32 160, %s98_s18  ;;  %s110_s23 = scalar_lea.hbm %s569_s0, %s313_s19 }
   0xe   : > { %p318_p9 = pnand %p321_p8, %p44_p3  ;;  %s111_s24 = sshll.u32 %s110_s23, 4  ;;  %s112_s24 = int_to_ptr.hbm [resolvable:$true] %s111_s24 }
   0xf   : > { %s102_s25 = scalar_lea.vmem [#allocation3], %s312_s20  ;;  %s99_s27 = scalar_lea.sflag [#allocation4], %s98_s18 }
  0x10   : > { %s113_s26 = sshll.u32 %s102_s25, 4  ;;  %s454_s28 = smov 1280   ;;  %s114_s26 = int_to_ptr.vmem [resolvable:$true] %s113_s26 }
  0x11   : > { %s455_s29 = smov 80   ;;  %p307_p10 = scmp.ge.s32.totalorder %s452_s11, 1 }
  0x12   : > { %320 = dma.hbm_to_vmem [thread:$0]  (!%p318_p9), %s112_s24, 2560, %s114_s26, %s99_s27, %s454_s28, %s454_s28, %s455_s29  }
  0x13   : > { %p121_p11 = scmp.lt.s32.totalorder %s452_s11, 3 }
  0x15   : > { %p122_p12 = pnand %p307_p10, %p121_p11 }
  0x16   : > { %s127_s30 = sand.u32 (!%p122_p12), 1, %s436_s7  }
  0x17   : > { %125 = sbr.rel (%p122_p12) target bundleno = 173 (0xad), region = 24  ;;  %s128_s3 = scalar_lea.sflag (!%p122_p12), [#allocation4], %s127_s30 }
  0x18   : > { %s314_s2 = smul.u32 (!%p122_p12), 160, %s127_s30 }
  0x1a   : > { %s521_s4 = scalar_lea.vmem (!%p122_p12), [#allocation3], %s314_s2 }
  0x1c   : > { %427 = dma.done.wait (%p505_p7), %s128_s3, 2560  }
  0x1d   : > { %429 = vsyncadd (%p505_p7), %s128_s3, 4294964736  ;;  %v165_v0 = vld [vmem:[%s521_s4] sm:$0xff]  ;;  %v166_v1 = vld [vmem:[%s521_s4 + $0x8] sm:$0xff]  ;;  %s308_s5 = sshll.u32 %s444_s9, 1  ;;  %vm218_vm0 = vcmask 7168  }
  0x1e   : > { %v167_v2 = vld [vmem:[%s521_s4 + $0x10] sm:$0xff]  ;;  %v189_v3 = vmax.f32 %v165_v0, %v166_v1  ;;  %v168_v4 = vld [vmem:[%s521_s4 + $0x18] sm:$0xff]  ;;  %v169_v8 = vld [vmem:[%s521_s4 + $0x20] sm:$0xff]  ;;  %p154_p13 = scmp.lt.s32.totalorder %s308_s5, 3 }
  0x1f   : > { %v175_v6 = vld [vmem:[%s521_s4 + $0x50] sm:$0xff]  ;;  %v176_v7 = vld [vmem:[%s521_s4 + $0x58] sm:$0xff]  ;;  %v177_v9 = vld [vmem:[%s521_s4 + $0x60] sm:$0xff] }
  0x20   : > { %v191_v5 = vmax.f32 %v189_v3, %v167_v2  ;;  %v190_v10 = vmax.f32 %v175_v6, %v176_v7  ;;  %v178_v12 = vld [vmem:[%s521_s4 + $0x68] sm:$0xff]  ;;  %v179_v16 = vld [vmem:[%s521_s4 + $0x70] sm:$0xff]  ;;  %v180_v20 = vld [vmem:[%s521_s4 + $0x78] sm:$0xff]  ;;  %s580_s5 = smov (!%p154_p13, %s308_s5), 3 }
  0x21   : > { %v170_v13 = vld [vmem:[%s521_s4 + $0x28] sm:$0xff]  ;;  %v171_v17 = vld [vmem:[%s521_s4 + $0x30] sm:$0xff]  ;;  %v172_v21 = vld [vmem:[%s521_s4 + $0x38] sm:$0xff]  ;;  %s309_s6 = sshll.u32 %s580_s5, 3 }
  0x22   : > { %v193_v11 = vmax.f32 %v191_v5, %v168_v4  ;;  %v192_v14 = vmax.f32 %v190_v10, %v177_v9  ;;  %v181_v24 = vld [vmem:[%s521_s4 + $0x80] sm:$0xff]  ;;  %v182_v28 = vld [vmem:[%s521_s4 + $0x88] sm:$0xff]  ;;  %v183_v32 = vld [vmem:[%s521_s4 + $0x90] sm:$0xff]  ;;  %s157_s15 = scalar_lea.vmem %s570_s1, %s309_s6 }
  0x23   : > { %v173_v25 = vld [vmem:[%s521_s4 + $0x40] sm:$0xff]  ;;  %v174_v29 = vld [vmem:[%s521_s4 + $0x48] sm:$0xff]  ;;  %v184_v36 = vld [vmem:[%s521_s4 + $0x98] sm:$0xff] }
  0x24   : > { %v195_v15 = vmax.f32 %v193_v11, %v169_v8  ;;  %v194_v18 = vmax.f32 %v192_v14, %v178_v12 }
  0x26   : > { %v197_v19 = vmax.f32 %v195_v15, %v170_v13  ;;  %v196_v22 = vmax.f32 %v194_v18, %v179_v16 }
  0x28   : > { %v199_v23 = vmax.f32 %v197_v19, %v171_v17  ;;  %v198_v26 = vmax.f32 %v196_v22, %v180_v20 }
  0x2a   : > { %v201_v27 = vmax.f32 %v199_v23, %v172_v21  ;;  %v200_v30 = vmax.f32 %v198_v26, %v181_v24 }
  0x2c   : > { %v203_v31 = vmax.f32 %v201_v27, %v173_v25  ;;  %v202_v33 = vmax.f32 %v200_v30, %v182_v28 }
  0x2e   : > { %v205_v34 = vmax.f32 %v203_v31, %v174_v29  ;;  %v204_v35 = vmax.f32 %v202_v33, %v183_v32 }
  0x30   : > { %214 = vmax.xlane.f32.xlu0 %v205_v34  ;;  %v206_v37 = vmax.f32 %v204_v35, %v184_v36 }
  0x38   : > { %216 = vmax.xlane.f32.xlu0 %v206_v37 }
  0xa3   : > { %v215_v38 = vpop.xlane.xlu0 %214 }
  0xa4   : > { %219 = vst.msk [vmem:[%s157_s15] sm:$0xff] %vm218_vm0, %v215_v38 }
  0xab   : > { %v217_v39 = vpop.xlane.xlu0 %216 }
  0xac   : > { %220 = vst.msk [vmem:[%s157_s15 + $0x8] sm:$0xff] %vm218_vm0, %v217_v39 }
  0xad PF: > { %s14_s11 = sadd.s32 1, %s452_s11   ;;  %s572_s6 = smov %s436_s7 }
  0xae   : > { %p11_p0 = scmp.ge.s32.totalorder %s14_s11, 4   ;;  %s573_s7 = smov %s440_s8 }
  0xaf   : > { %s574_s8 = smov %s511_s17  ;;  %s575_s9 = smov %s448_s10 }
  0xb0   : > { %s576_s10 = smov %s578_s13  ;;  %13 = sbr.rel (!%p11_p0) target bundleno = 4 (0x4), region = 72 }
  0xb5   :  { %243 = vsyncpa [#allocation4], 1 }
  0xb6   :  { %245 = vsyncpa [#allocation4 + $0x1], 1 }

</bundles_post_ra>
